<compile_context>
chip_gen: v6e
topology: v6e:2x2x1
jax: 0.10.0
libtpu: 0.0.40
codegen_flags: <defaults>
</compile_context>

<pallas_src>
import functools

import jax
import jax.numpy as jnp
from jax.experimental import pallas as pl
from jax.experimental.pallas import tpu as pltpu


# ----------------------------------------------------------------------------
# Kernel
# ----------------------------------------------------------------------------
def dsu_cell_kernel(x_ref, w1_ref, b1_ref, w2_ref, b2_ref, o_ref):
    # x_ref:  (tb, in_dim)       x.dtype batch tile (cast to bf16 here, on the
    #                            VPU -- the kernel is mem-bound, VALU has slack)
    # w1_ref: (in_dim, mid)      bf16, resident across the grid
    # b1_ref: (1, mid)           f32
    # w2_ref: (mid, out_width)   bf16, resident across the grid
    # b2_ref: (1, out_width)     f32
    # o_ref:  (tb, out_width)
    x = x_ref[...].astype(w1_ref.dtype)
    # MXU matmul, f32 accumulation.
    h = jnp.dot(x, w1_ref[...], preferred_element_type=jnp.float32)
    # Bias add + ReLU in f32 on the VPU (v5e has no bf16 VPU).
    h = jnp.maximum(h + b1_ref[...], 0.0)
    # Feed the second matmul at the MXU's native bf16 rate.
    h = h.astype(w2_ref.dtype)
    y = jnp.dot(h, w2_ref[...], preferred_element_type=jnp.float32) + b2_ref[...]
    o_ref[...] = y.astype(o_ref.dtype)


# ----------------------------------------------------------------------------
# Generation-aware knobs
# ----------------------------------------------------------------------------
def _device_kind():
    try:
        return jax.devices()[0].device_kind.lower()
    except Exception:
        return ""


def _is_v5e():
    k = _device_kind()
    return ("v5e" in k) or ("v5 lite" in k) or ("v5litepod" in k)


def _vmem_config():
    """(batch-tile budget bytes, vmem_limit_bytes)."""
    k = _device_kind()
    if "v7" in k or "7x" in k:
        # 64 MiB physical per TC -- leave headroom for Mosaic internal scratch.
        return 40 << 20, 50 << 20
    if "v6" in k or "v5" in k:
        # 128 MiB parts: exploit the extra VMEM with larger batch tiles.
        return 88 << 20, 100 << 20
    # Unknown / older generations: conservative.
    return 40 << 20, 64 << 20


def _choose_tb(B, per_row_bytes, budget_bytes):
    """Batch tile: multiple of 8 (or the full batch when B < 8), a divisor of
    B whenever possible (no batch pad / no post-kernel slice), >= 4 grid steps
    with an even count preferred (>= 2 per TensorCore on megacore parts),
    capped by the available VMEM budget."""
    if B <= 8:
        return B  # single step; block == full array dim is always legal
    cap = max(8, int(budget_bytes // max(per_row_bytes, 1)) // 8 * 8)
    target = min(512, cap, max(8, (B // 4) // 8 * 8))
    target = max(8, target)
    if B % 8 == 0:
        best_odd = None
        t = target
        while t >= 8:
            if B % t == 0:
                if (B // t) % 2 == 0:
                    return t            # even step count: balanced megacore split
                if best_odd is None:
                    best_odd = t
            t -= 8
        if best_odd is not None:
            return best_odd
    return target                        # falls back to batch padding


# ----------------------------------------------------------------------------
# One-time parameter preparation (do NOT call per forward step).
# ----------------------------------------------------------------------------
def prepare_dsu_params(w1, b1, w2, b2, *, compute_dtype=jnp.bfloat16,
                       pad_output_lanes=None):
    """Transpose PyTorch-layout weights to [in, out] and cast to the compute
    dtype.  Biases stay f32 (added post-accumulation).  On v5e (single vector
    store slot) the output dim is zero-padded up to a multiple of 128 so stores
    are unmasked; elsewhere the exact output width is kept (masked stores are
    cheaper than an extra XLA slice pass)."""
    mid, in_dim = w1.shape
    out_dim, mid2 = w2.shape
    assert mid == mid2
    if pad_output_lanes is None:
        pad_output_lanes = _is_v5e()
    out_width = out_dim
    if pad_output_lanes and out_dim % 128 != 0:
        out_width = ((out_dim + 127) // 128) * 128

    w1t = jnp.asarray(w1).T.astype(compute_dtype)               # (in_dim, mid)
    b1r = jnp.asarray(b1).reshape(1, mid).astype(jnp.float32)   # (1, mid)

    w2t = jnp.asarray(w2).T                                     # (mid, out_dim)
    b2v = jnp.asarray(b2)
    if out_width != out_dim:
        w2t = jnp.pad(w2t, ((0, 0), (0, out_width - out_dim)))
        b2v = jnp.pad(b2v, (0, out_width - out_dim))
    w2t = w2t.astype(compute_dtype)
    b2r = b2v.reshape(1, out_width).astype(jnp.float32)

    return {
        "w1t": w1t, "b1": b1r, "w2t": w2t, "b2": b2r,
        "in_dim": in_dim, "mid": mid, "out_dim": out_dim, "out_width": out_width,
        "compute_dtype": compute_dtype,
    }


# ----------------------------------------------------------------------------
# Forward wrapper
# ----------------------------------------------------------------------------
def dsu_cell_forward(x, params, *, tb=None, out_dtype=None):
    """x: [..., input_size]; params from prepare_dsu_params.
    Returns [..., 3*hidden] in out_dtype (default: x.dtype)."""
    in_dim = params["in_dim"]
    mid = params["mid"]
    out_dim = params["out_dim"]
    out_width = params["out_width"]
    w1t, b1r, w2t, b2r = params["w1t"], params["b1"], params["w2t"], params["b2"]

    orig_shape = x.shape
    assert orig_shape[-1] == in_dim
    x2 = x.reshape(-1, in_dim)
    B = x2.shape[0]
    if out_dtype is None:
        out_dtype = x.dtype

    vmem_budget, vmem_limit = _vmem_config()

    x_itemsize = jnp.dtype(x2.dtype).itemsize
    out_itemsize = jnp.dtype(out_dtype).itemsize
    # Resident operands are still double-buffered by the default pipeline:
    # count them (x2) against the tile budget instead of ignoring them.
    weight_bytes = 2 * (w1t.size * w1t.dtype.itemsize
                        + w2t.size * w2t.dtype.itemsize
                        + (b1r.size + b2r.size) * 4)
    per_row = 2 * in_dim * x_itemsize + 2 * out_width * out_itemsize

    if tb is None:
        tb = _choose_tb(B, per_row, max(vmem_budget - weight_bytes, 1 << 20))
    tb = int(tb)

    # Pad the batch only when unavoidable (tb does not divide B).
    if B % tb == 0:
        Bp, xp = B, x2
    else:
        Bp = ((B + tb - 1) // tb) * tb
        xp = jnp.pad(x2, ((0, Bp - B), (0, 0)))

    grid = (Bp // tb,)
    flops = 2 * Bp * in_dim * mid + 2 * Bp * mid * out_width
    bytes_accessed = (Bp * in_dim * x_itemsize
                      + Bp * out_width * out_itemsize
                      + int(w1t.size) * w1t.dtype.itemsize
                      + int(w2t.size) * w2t.dtype.itemsize
                      + (int(b1r.size) + int(b2r.size)) * 4)

    y = pl.pallas_call(
        dsu_cell_kernel,
        out_shape=jax.ShapeDtypeStruct((Bp, out_width), out_dtype),
        grid_spec=pltpu.PrefetchScalarGridSpec(
            num_scalar_prefetch=0,
            grid=grid,
            in_specs=[
                pl.BlockSpec((tb, in_dim), lambda i: (i, 0)),        # x tile
                pl.BlockSpec((in_dim, mid), lambda i: (0, 0)),       # w1^T resident
                pl.BlockSpec((1, mid), lambda i: (0, 0)),            # b1
                pl.BlockSpec((mid, out_width), lambda i: (0, 0)),    # w2^T resident
                pl.BlockSpec((1, out_width), lambda i: (0, 0)),      # b2
            ],
            out_specs=pl.BlockSpec((tb, out_width), lambda i: (i, 0)),
        ),
        compiler_params=pltpu.CompilerParams(
            dimension_semantics=("parallel",),
            vmem_limit_bytes=vmem_limit,
        ),
        cost_estimate=pl.CostEstimate(
            flops=int(flops), transcendentals=0,
            bytes_accessed=int(bytes_accessed)),
    )(xp, w1t, b1r, w2t, b2r)

    # Only the unavoidable trims remain (common case: both are no-ops).
    if Bp != B:
        y = y[:B]
    if out_width != out_dim:   # only on the v5e lane-padded path
        y = y[:, :out_dim]
    return y.reshape(*orig_shape[:-1], out_dim)


# ----------------------------------------------------------------------------
# Self-test
# ----------------------------------------------------------------------------
if __name__ == "__main__":
    # Small shapes consistent with the module (input_size >= 16 so mid >= 1);
    # batch chosen so the kernel exercises a multi-step tiled grid (tb divides
    # the batch -> no padding, no post-kernel slice).
    batch = 256
    input_size = 64
    hidden_size = 32
    mid = input_size // 16          # 4
    out_dim = 3 * hidden_size       # 96

    key = jax.random.PRNGKey(0)
    kx, k1, k2, k3, k4 = jax.random.split(key, 5)

    x = jax.random.normal(kx, (batch, input_size), dtype=jnp.float32)

    # Deterministic synthetic parameters (PyTorch Linear layout: [out, in]).
    lim1 = 1.0 / jnp.sqrt(input_size)
    w1 = jax.random.uniform(k1, (mid, input_size), jnp.float32, -lim1, lim1)
    b1 = jax.random.uniform(k2, (mid,), jnp.float32, -lim1, lim1)
    lim2 = 1.0 / jnp.sqrt(mid)
    w2 = jax.random.uniform(k3, (out_dim, mid), jnp.float32, -lim2, lim2)
    b2 = jax.random.uniform(k4, (out_dim,), jnp.float32, -lim2, lim2)

    # One-time parameter prep (transpose / optional lane pad / bf16 cast).
    params = prepare_dsu_params(w1, b1, w2, b2)

    fwd = jax.jit(functools.partial(dsu_cell_forward, params=params))
    out = jax.block_until_ready(fwd(x))

    # Reference #1: mirrors the kernel's bf16-operand / f32-accumulate numerics.
    f32 = jnp.float32
    xbf = x.astype(jnp.bfloat16).astype(f32)
    w1bf = w1.astype(jnp.bfloat16).astype(f32)
    w2bf = w2.astype(jnp.bfloat16).astype(f32)
    h_ref = jnp.maximum(xbf @ w1bf.T + b1, 0.0)
    h_ref = h_ref.astype(jnp.bfloat16).astype(f32)
    ref_bf16 = h_ref @ w2bf.T + b2

    # Reference #2: the true f32 module numerics (parity sanity check).
    ref_f32 = jnp.maximum(x @ w1.T + b1, 0.0) @ w2.T + b2

    assert out.shape == (batch, out_dim)
    assert jnp.allclose(out, ref_bf16, atol=2e-3, rtol=2e-3), "mismatch vs bf16 reference"
    assert float(jnp.max(jnp.abs(out - ref_f32))) < 0.1, "drift vs f32 module reference"

    print("KERNEL_OK")
</pallas_src>

<mosaic_0001>
module attributes {stable_mosaic.version = 11 : i64} {
  func.func @dsu_cell_kernel(%arg0: i32, %arg1: memref<64x64xf32, #tpu.memory_space<vmem>>, %arg2: memref<64x4xbf16, #tpu.memory_space<vmem>>, %arg3: memref<1x4xf32, #tpu.memory_space<vmem>>, %arg4: memref<4x96xbf16, #tpu.memory_space<vmem>>, %arg5: memref<1x96xf32, #tpu.memory_space<vmem>>, %arg6: memref<64x96xf32, #tpu.memory_space<vmem>>) attributes {dimension_semantics = [#tpu.dimension_semantics<parallel>], iteration_bounds = array<i64: 4>, scalar_prefetch = 0 : i64, scratch_operands = 0 : i64, tpu.core_type = #tpu.core_type<tc>, window_params = [{transform_indices = @transform_0, window_bounds = array<i64: 64, 64>}, {pipeline_mode = #tpu.pipeline_mode<synchronous>, transform_indices = @transform_1, window_bounds = array<i64: 64, 4>}, {pipeline_mode = #tpu.pipeline_mode<synchronous>, transform_indices = @transform_2, window_bounds = array<i64: 1, 4>}, {pipeline_mode = #tpu.pipeline_mode<synchronous>, transform_indices = @transform_3, window_bounds = array<i64: 4, 96>}, {pipeline_mode = #tpu.pipeline_mode<synchronous>, transform_indices = @transform_4, window_bounds = array<i64: 1, 96>}, {transform_indices = @transform_5, window_bounds = array<i64: 64, 96>}]} {
    %c0 = arith.constant 0 : index
    %c0_0 = arith.constant 0 : index
    %0 = vector.load %arg1[%c0, %c0_0] : memref<64x64xf32, #tpu.memory_space<vmem>>, vector<64x64xf32>
    %1 = arith.truncf %0 : vector<64x64xf32> to vector<64x64xbf16>
    %c0_1 = arith.constant 0 : index
    %c0_2 = arith.constant 0 : index
    %2 = vector.load %arg2[%c0_1, %c0_2] : memref<64x4xbf16, #tpu.memory_space<vmem>>, vector<64x4xbf16>
    %cst = arith.constant dense<0.000000e+00> : vector<64x4xf32>
    %3 = tpu.matmul %1, %2, %cst {dimension_numbers = #tpu.dot_dimension_numbers<[1], [0], [0], [1], [0, 0, 1, 1], [], []>} : vector<64x64xbf16>, vector<64x4xbf16>, vector<64x4xf32> -> vector<64x4xf32>
    %c0_3 = arith.constant 0 : index
    %c0_4 = arith.constant 0 : index
    %4 = vector.load %arg3[%c0_3, %c0_4] : memref<1x4xf32, #tpu.memory_space<vmem>>, vector<1x4xf32>
    %5 = vector.broadcast %4 : vector<1x4xf32> to vector<64x4xf32>
    %6 = arith.addf %3, %5 : vector<64x4xf32>
    %cst_5 = arith.constant 0.000000e+00 : f32
    %7 = vector.broadcast %cst_5 : f32 to vector<64x4xf32>
    %8 = arith.maximumf %6, %7 : vector<64x4xf32>
    %9 = arith.truncf %8 : vector<64x4xf32> to vector<64x4xbf16>
    %c0_6 = arith.constant 0 : index
    %c0_7 = arith.constant 0 : index
    %10 = vector.load %arg4[%c0_6, %c0_7] : memref<4x96xbf16, #tpu.memory_space<vmem>>, vector<4x96xbf16>
    %cst_8 = arith.constant dense<0.000000e+00> : vector<64x96xf32>
    %11 = tpu.matmul %9, %10, %cst_8 {dimension_numbers = #tpu.dot_dimension_numbers<[1], [0], [0], [1], [0, 0, 1, 1], [], []>} : vector<64x4xbf16>, vector<4x96xbf16>, vector<64x96xf32> -> vector<64x96xf32>
    %c0_9 = arith.constant 0 : index
    %c0_10 = arith.constant 0 : index
    %12 = vector.load %arg5[%c0_9, %c0_10] : memref<1x96xf32, #tpu.memory_space<vmem>>, vector<1x96xf32>
    %13 = vector.broadcast %12 : vector<1x96xf32> to vector<64x96xf32>
    %14 = arith.addf %11, %13 : vector<64x96xf32>
    %c0_11 = arith.constant 0 : index
    %c0_12 = arith.constant 0 : index
    %15 = vector.load %arg6[%c0_11, %c0_12] : memref<64x96xf32, #tpu.memory_space<vmem>>, vector<64x96xf32>
    tpu.vector_store %arg6[%c0_11, %c0_12], %14 {strides = array<i32>} : memref<64x96xf32, #tpu.memory_space<vmem>>, vector<64x96xf32>,
    return
  }
  func.func @transform_0(%arg0: i32) -> (i32, i32) {
    %c0_i32 = arith.constant 0 : i32
    %c0_i32_0 = arith.constant 0 : i32
    return %arg0, %c0_i32 : i32, i32
  }
  func.func @transform_1(%arg0: i32) -> (i32, i32) {
    %c0_i32 = arith.constant 0 : i32
    %c0_i32_0 = arith.constant 0 : i32
    %c0_i32_1 = arith.constant 0 : i32
    return %c0_i32, %c0_i32_0 : i32, i32
  }
  func.func @transform_2(%arg0: i32) -> (i32, i32) {
    %c0_i32 = arith.constant 0 : i32
    %c0_i32_0 = arith.constant 0 : i32
    %c0_i32_1 = arith.constant 0 : i32
    return %c0_i32, %c0_i32_0 : i32, i32
  }
  func.func @transform_3(%arg0: i32) -> (i32, i32) {
    %c0_i32 = arith.constant 0 : i32
    %c0_i32_0 = arith.constant 0 : i32
    %c0_i32_1 = arith.constant 0 : i32
    return %c0_i32, %c0_i32_0 : i32, i32
  }
  func.func @transform_4(%arg0: i32) -> (i32, i32) {
    %c0_i32 = arith.constant 0 : i32
    %c0_i32_0 = arith.constant 0 : i32
    %c0_i32_1 = arith.constant 0 : i32
    return %c0_i32, %c0_i32_0 : i32, i32
  }
  func.func @transform_5(%arg0: i32) -> (i32, i32) {
    %c0_i32 = arith.constant 0 : i32
    %c0_i32_0 = arith.constant 0 : i32
    return %arg0, %c0_i32 : i32, i32
  }
}

</mosaic_0001>

<bundles_post_ra>
// kernel: dsu_cell_forward.1
= control target key start
LH: loop header
LB: loop body
LE: loop exit
PB: predicated region body
PF: predicated region fallthrough
CT: control target
= control target key end

     0   :  { %s640_s18 = smov 0   ;;  %s701_s0 = inlined_call_operand.vmem [shape: f32[256,64], index: 0, kind: input, shape index: {}]   ;;  %s702_s1 = inlined_call_operand.vmem [shape: bf16[64,4], index: 1, kind: input, shape index: {}]   ;;  %s703_s2 = inlined_call_operand.vmem [shape: f32[1,4], index: 2, kind: input, shape index: {}]   ;;  %s704_s3 = inlined_call_operand.vmem [shape: bf16[4,96], index: 3, kind: input, shape index: {}]   ;;  %s705_s4 = inlined_call_operand.vmem [shape: f32[1,96], index: 4, kind: input, shape index: {}]   ;;  %s706_s5 = inlined_call_operand.vmem [shape: f32[256,96], index: 5, kind: output, shape index: {}]  }
   0x1 LB: > { %s525_s19 = sadd.s32 4294967295, %s608_s18   ;;  %p529_p0 = scmp.ge.s32.totalorder %s608_s18, 1  ;;  %s608_s18 = sphi %s640_s18, %s15_s18  }
   0x2   : > { %p188_p1 = scmp.lt.s32.totalorder %s608_s18, 5 }
   0x4   : > { %p189_p2 = pnand %p529_p0, %p188_p1 }
   0x5   : > { %s530_s22 = sshll.u32 (!%p189_p2), %s525_s19, 3 }
   0x6   : > { %192 = sbr.rel (%p189_p2) target bundleno = 444 (0x1bc), region = 40  ;;  %p217_p3 = scmp.lt.s32.totalorder (!%p189_p2), %s530_s22, 31 }
   0xb   : > { %v598_v0 = vld [vmem:[%s702_s1 + $0x18] sm:$0xff]   ;;  %v599_v1 = vld [vmem:[%s702_s1 + $0x10] sm:$0xff]   ;;  %s708_s22 = smov (!%p217_p3, %s530_s22), 31  ;;  %v600_v2 = vld [vmem:[%s702_s1 + $0x8] sm:$0xff]   ;;  %vm280_vm0 = vcmask 523264   ;;  %vm391_vm1 = vcmask 1041408  }
   0xc   : > { %563 = vmatprep.subr.bf16.mxu0 %v598_v0  ;;  %s531_s27 = sshll.u32 %s708_s22, 3  ;;  %v601_v5 = vld [vmem:[%s702_s1] sm:$0xff]   ;;  %vm378_vm2 = vcmask 31744   ;;  %vm460_vm3 = vcmask 785408  }
   0xd   : > { %564 = vmatpush3.bf16.msra.mxu0 %v598_v0  ;;  %s220_s30 = scalar_lea.vmem %s701_s0, %s531_s27  ;;  %v370_v16 = vld [vmem:[%s704_s3] sm:$0x3]  ;;  %s226_s16 = scalar_lea.vmem %s706_s5, %s531_s27 }
   0xe   : > { %565 = vmatprep.subr.bf16.mxu0 %v599_v1  ;;  %v229_v3 = vld [vmem:[%s220_s30] sm:$0xff]  ;;  %v230_v4 = vld [vmem:[%s220_s30 + $0x8] sm:$0xff]  ;;  %v231_v7 = vld [vmem:[%s220_s30 + $0x10] sm:$0xff]  ;;  %589 = vmatprep.subr.msk.bf16.mxu1 %vm391_vm1, %v370_v16  ;;  %v393_v17 = vsel %vm391_vm1, %v370_v16, 0 }
   0xf   : > { %v237_v6 = vpack.c.bf16 %v230_v4, %v229_v3  ;;  %v232_v8 = vld [vmem:[%s220_s30 + $0x18] sm:$0xff]  ;;  %v233_v9 = vld [vmem:[%s220_s30 + $0x20] sm:$0xff]  ;;  %v234_v10 = vld [vmem:[%s220_s30 + $0x28] sm:$0xff]  ;;  %580 = vmatpush3.bf16.msra.mxu1 %v393_v17 }
  0x10   : > { %v238_v11 = vpack.c.bf16 %v232_v8, %v231_v7  ;;  %v239_v12 = vpack.c.bf16 %v234_v10, %v233_v9  ;;  %v235_v13 = vld [vmem:[%s220_s30 + $0x30] sm:$0xff]  ;;  %v236_v14 = vld [vmem:[%s220_s30 + $0x38] sm:$0xff]  ;;  %v534_v20 = vld [vmem:[%s703_s2] ss:$0 sm:$0xff] }
  0x11   : > { %566 = vmatpush3.bf16.msra.mxu0 %v599_v1  ;;  %571 = vmatprep.mubr.msk.bf16.mxu0 %vm280_vm0, %v237_v6  ;;  %v240_v15 = vpack.c.bf16 %v236_v14, %v235_v13  ;;  %v543_v47 = vld [vmem:[%s705_s4] ss:$0 sm:$0xff] }
  0x12   : > { %567 = vmatprep.subr.bf16.mxu0 %v600_v2 }
  0x15   : > { %568 = vmatpush3.bf16.msra.mxu0 %v600_v2 }
  0x16   : > { %569 = vmatprep.subr.bf16.mxu0 %v601_v5 }
  0x19   : > { %570 = vmatpush3.bf16.msra.mxu0 %v601_v5 }
  0x1c   : > { %572 = vmatmul.mubr.msk.bf16.vlgmr.msra.gmra.mxu0 %vm280_vm0, %v238_v11 }
  0x1d   : > { %575 = vmatprep.mubr.msk.bf16.mxu0 %vm280_vm0, %v239_v12 }
  0x24   : > { %576 = vmatmul.mubr.msk.bf16.gmra.mxu0 %vm280_vm0, %v240_v15 }
  0xdc   : > { %v573_v18 = vpop.f32.mrf.mxu0 }
  0xdd   : > { %v336_v24 = vadd.f32 %v573_v18, %v534_v20 }
  0xde   : > { %v327_v19 = vpop.f32.mrf.mxu0 }
  0xdf   : > { %v328_v22 = vadd.f32 %v534_v20, %v327_v19  ;;  %v360_v31 = vmax.f32 %v336_v24, 0.0 }
  0xe0   : > { %v574_v21 = vpop.f32.mrf.mxu0 }
  0xe1   : > { %v339_v23 = vadd.f32 %v574_v21, %v534_v20  ;;  %v358_v29 = vmax.f32 %v328_v22, 0.0 }
  0xe2   : > { %v330_v25 = vpop.f32.mrf.mxu0 }
  0xe3   : > { %v331_v26 = vadd.f32 %v534_v20, %v330_v25  ;;  %v361_v27 = vmax.f32 %v339_v23, 0.0 }
  0xe4   : > { %v577_v28 = vpop.f32.mrf.mxu0 }
  0xe5   : > { %v359_v30 = vmax.f32 %v331_v26, 0.0  ;;  %v367_v34 = vpack.c.bf16 %v361_v27, %v360_v31  ;;  %v352_v38 = vadd.f32 %v577_v28, %v534_v20 }
  0xe6   : > { %v343_v32 = vpop.f32.mrf.mxu0 }
  0xe7   : > { %v366_v33 = vpack.c.bf16 %v359_v30, %v358_v29  ;;  %v344_v36 = vadd.f32 %v534_v20, %v343_v32  ;;  %v364_v44 = vmax.f32 %v352_v38, 0.0 }
  0xe8   : > { %v578_v35 = vpop.f32.mrf.mxu0 }
  0xe9   : > { %v355_v37 = vadd.f32 %v578_v35, %v534_v20  ;;  %581 = vmatprep.mubr.msk.bf16.mxu1 %vm378_vm2, %v366_v33  ;;  %v362_v42 = vmax.f32 %v344_v36, 0.0 }
  0xea   : > { %v346_v39 = vpop.f32.mrf.mxu0  ;;  %582 = vmatmul.mubr.msk.bf16.vlgmr.msra.gmra.mxu1 %vm378_vm2, %v367_v34 }
  0xeb   : > { %v347_v40 = vadd.f32 %v534_v20, %v346_v39  ;;  %v365_v41 = vmax.f32 %v355_v37, 0.0 }
  0xed   : > { %v363_v43 = vmax.f32 %v347_v40, 0.0  ;;  %v369_v46 = vpack.c.bf16 %v365_v41, %v364_v44 }
  0xef   : > { %v368_v45 = vpack.c.bf16 %v363_v43, %v362_v42 }
  0xf1   : > { %585 = vmatprep.mubr.msk.bf16.mxu1 %vm378_vm2, %v368_v45 }
  0xf2   : > { %586 = vmatmul.mubr.msk.bf16.gmra.mxu1 %vm378_vm2, %v369_v46 }
 0x1aa   : > { %v583_v48 = vpop.f32.mrf.mxu1 }
 0x1ab   : > { %v438_v49 = vadd.f32 %v583_v48, %v543_v47 }
 0x1ac   : > { %v429_v50 = vpop.f32.mrf.mxu1 }
 0x1ad   : > { %463 = vst.msk [vmem:[%s226_s16 + $0x10] sm:$0xff] %vm460_vm3, %v438_v49  ;;  %v430_v51 = vadd.f32 %v543_v47, %v429_v50 }
 0x1ae   : > { %v584_v52 = vpop.f32.mrf.mxu1 }
 0x1af   : > { %461 = vst.msk [vmem:[%s226_s16] sm:$0xff] %vm460_vm3, %v430_v51  ;;  %v441_v53 = vadd.f32 %v584_v52, %v543_v47 }
 0x1b0   : > { %v432_v54 = vpop.f32.mrf.mxu1 }
 0x1b1   : > { %464 = vst.msk [vmem:[%s226_s16 + $0x18] sm:$0xff] %vm460_vm3, %v441_v53  ;;  %v433_v55 = vadd.f32 %v543_v47, %v432_v54 }
 0x1b2   : > { %v587_v56 = vpop.f32.mrf.mxu1 }
 0x1b3   : > { %462 = vst.msk [vmem:[%s226_s16 + $0x8] sm:$0xff] %vm460_vm3, %v433_v55  ;;  %v454_v57 = vadd.f32 %v587_v56, %v543_v47 }
 0x1b4   : > { %v445_v58 = vpop.f32.mrf.mxu1 }
 0x1b5   : > { %467 = vst.msk [vmem:[%s226_s16 + $0x30] sm:$0xff] %vm460_vm3, %v454_v57  ;;  %v446_v59 = vadd.f32 %v543_v47, %v445_v58 }
 0x1b6   : > { %v588_v60 = vpop.f32.mrf.mxu1 }
 0x1b7   : > { %465 = vst.msk [vmem:[%s226_s16 + $0x20] sm:$0xff] %vm460_vm3, %v446_v59  ;;  %v457_v61 = vadd.f32 %v588_v60, %v543_v47 }
 0x1b8   : > { %v448_v62 = vpop.f32.mrf.mxu1 }
 0x1b9   : > { %468 = vst.msk [vmem:[%s226_s16 + $0x38] sm:$0xff] %vm460_vm3, %v457_v61  ;;  %v449_v63 = vadd.f32 %v543_v47, %v448_v62 }
 0x1bb   : > { %466 = vst.msk [vmem:[%s226_s16 + $0x28] sm:$0xff] %vm460_vm3, %v449_v63 }
 0x1bc PF: > { %s15_s18 = sadd.s32 1, %s608_s18  }
 0x1bd   : > { %p12_p4 = scmp.ge.s32.totalorder %s15_s18, 6  }
 0x1bf   :  { %14 = sbr.rel (!%p12_p4) target bundleno = 1 (0x1), region = 70 }

</bundles_post_ra>
